<compile_context>
chip_gen: v6e
topology: v6e:2x2x1
jax: 0.10.0
libtpu: 0.0.40
codegen_flags: <defaults>
</compile_context>

<pallas_src>
import jax
import jax.numpy as jnp
from jax.experimental import pallas as pl
from jax.experimental.pallas import tpu as pltpu


def _mine_kernel(x_ref, z_ref, wx_ref, wz_ref, b1_ref, wf_ref, bf_ref, o_ref):
    # First layer: two tall-skinny bf16 matmuls accumulated in f32 on the MXU.
    h1 = jnp.dot(x_ref[...], wx_ref[...], preferred_element_type=jnp.float32)
    h1 = h1 + jnp.dot(z_ref[...], wz_ref[...], preferred_element_type=jnp.float32)
    h1 = h1 + b1_ref[...]                      # fused bias (bx + bz), f32
    h1 = jnp.where(h1 >= 0, h1, 0.01 * h1)     # leaky_relu on the VPU
    # Second layer (out_features == 1): VPU multiply + lane reduction instead
    # of an N=1 MXU matmul.
    h2 = jnp.sum(h1 * wf_ref[...], axis=-1, keepdims=True)
    o_ref[...] = (h2 + bf_ref[...]).astype(o_ref.dtype)


def mine_forward(x, z, params, *, block_b=512, compute_dtype=jnp.bfloat16):
    """x: [B, x_dim], z: [B, z_dim] -> [B, 1] (float32)."""
    wx, bx, wz, bz, wf, bf = params
    B, x_dim = x.shape
    z_dim = z.shape[1]
    h = wx.shape[1]

    # Fold biases / reshape Wf once in the wrapper (all tiny).
    b1 = (bx.astype(jnp.float32) + bz.astype(jnp.float32)).reshape(1, h)
    wf_row = wf.astype(jnp.float32).reshape(1, h)
    bf2 = bf.astype(jnp.float32).reshape(1, 1)

    # bf16 MXU inputs halve HBM traffic; accumulation stays f32 in-kernel.
    xc = x.astype(compute_dtype)
    zc = z.astype(compute_dtype)
    wxc = wx.astype(compute_dtype)
    wzc = wz.astype(compute_dtype)

    # Batch tile: whole batch if it is small, otherwise block_b (mult. of 8).
    tb = B if B <= block_b else block_b
    grid = (pl.cdiv(B, tb),)

    tile = lambda d: pl.BlockSpec((tb, d), lambda i: (i, 0))
    resident = lambda shape: pl.BlockSpec(shape, lambda i: (0,) * len(shape))

    # VMEM budget: double-buffered pipelined streams + resident weights +
    # f32 intermediates, doubled for headroom, capped well below v7x's 64 MiB.
    itemsize = jnp.dtype(compute_dtype).itemsize
    pipelined = 2 * tb * (x_dim + z_dim) * itemsize + 2 * tb * 4
    resident_b = 2 * (x_dim + z_dim) * h * itemsize + 4 * (2 * h + 1)
    intermediates = 2 * tb * h * 4
    vmem_limit = int(min(max(2 * (pipelined + resident_b + intermediates),
                             16 * 1024 * 1024),
                         48 * 1024 * 1024))

    flops = 2 * B * (x_dim + z_dim) * h + 4 * B * h
    bytes_accessed = (xc.size + zc.size + wxc.size + wzc.size) * itemsize \
        + (b1.size + wf_row.size + bf2.size) * 4 + B * 4

    out = pl.pallas_call(
        _mine_kernel,
        out_shape=jax.ShapeDtypeStruct((B, 1), jnp.float32),
        grid=grid,
        in_specs=[
            tile(x_dim),              # x   [TB, x_dim]  (pipelined)
            tile(z_dim),              # z   [TB, z_dim]  (pipelined)
            resident(wxc.shape),      # Wx  [x_dim, h]   (resident)
            resident(wzc.shape),      # Wz  [z_dim, h]   (resident)
            resident(b1.shape),       # b1  [1, h]       (resident, f32)
            resident(wf_row.shape),   # Wf  [1, h]       (resident, f32)
            resident(bf2.shape),      # bf  [1, 1]       (resident, f32)
        ],
        out_specs=pl.BlockSpec((tb, 1), lambda i: (i, 0)),
        compiler_params=pltpu.CompilerParams(
            dimension_semantics=("parallel",),
            vmem_limit_bytes=vmem_limit,
        ),
        cost_estimate=pl.CostEstimate(
            flops=flops, transcendentals=0, bytes_accessed=bytes_accessed),
    )(xc, zc, wxc, wzc, b1, wf_row, bf2)
    return out


def init_mine_params(key, x_dim, z_dim, hidden_dim):
    """Deterministic synthetic parameters (PyTorch-like uniform init)."""
    h = hidden_dim // 4
    ks = jax.random.split(key, 6)

    def lin(kw, kb, fan_in, fan_out):
        bound = 1.0 / jnp.sqrt(fan_in)
        # Stored as [in, out] (transposed vs. torch's [out, in]) so kernel does x @ W.
        w = jax.random.uniform(kw, (fan_in, fan_out), jnp.float32, -bound, bound)
        b = jax.random.uniform(kb, (1, fan_out), jnp.float32, -bound, bound)
        return w, b

    wx, bx = lin(ks[0], ks[1], x_dim, h)
    wz, bz = lin(ks[2], ks[3], z_dim, h)
    wf, bf = lin(ks[4], ks[5], h, 1)
    return (wx, bx, wz, bz, wf, bf)


def mine_reference(x, z, params, compute_dtype=jnp.float32):
    """Pure-JAX reference; compute_dtype mirrors the kernel's matmul dtype."""
    wx, bx, wz, bz, wf, bf = params
    xc, zc = x.astype(compute_dtype), z.astype(compute_dtype)
    wxc, wzc = wx.astype(compute_dtype), wz.astype(compute_dtype)
    h1 = (jnp.dot(xc, wxc, preferred_element_type=jnp.float32)
          + jnp.dot(zc, wzc, preferred_element_type=jnp.float32)
          + (bx.astype(jnp.float32) + bz.astype(jnp.float32)))
    h1 = jnp.where(h1 >= 0, h1, 0.01 * h1)
    h2 = jnp.sum(h1 * wf.astype(jnp.float32).reshape(1, -1),
                 axis=-1, keepdims=True)
    return h2 + bf.astype(jnp.float32).reshape(1, 1)


if __name__ == "__main__":
    B, x_dim, z_dim, hidden_dim = 8, 16, 8, 32
    key = jax.random.PRNGKey(0)
    kx, kz, kp = jax.random.split(key, 3)
    x = jax.random.normal(kx, (B, x_dim), jnp.float32)
    z = jax.random.normal(kz, (B, z_dim), jnp.float32)
    params = init_mine_params(kp, x_dim, z_dim, hidden_dim)

    out = mine_forward(x, z, params)
    out = jax.block_until_ready(out)
    assert out.shape == (B, 1)

    # Tight check vs a reference that mirrors the kernel's bf16-matmul numerics.
    ref_bf16 = mine_reference(x, z, params, compute_dtype=jnp.bfloat16)
    # Loose check vs the exact f32 module semantics.
    ref_f32 = mine_reference(x, z, params, compute_dtype=jnp.float32)
    assert jnp.allclose(out, ref_bf16, atol=2e-3, rtol=2e-3), (out, ref_bf16)
    assert jnp.allclose(out, ref_f32, atol=5e-2, rtol=5e-2), (out, ref_f32)
    print("KERNEL_OK")
</pallas_src>

<mosaic_0001>
module attributes {stable_mosaic.version = 11 : i64} {
  func.func @_mine_kernel(%arg0: i32, %arg1: memref<8x16xbf16, #tpu.memory_space<vmem>>, %arg2: memref<8x8xbf16, #tpu.memory_space<vmem>>, %arg3: memref<16x8xbf16, #tpu.memory_space<vmem>>, %arg4: memref<8x8xbf16, #tpu.memory_space<vmem>>, %arg5: memref<1x8xf32, #tpu.memory_space<vmem>>, %arg6: memref<1x8xf32, #tpu.memory_space<vmem>>, %arg7: memref<1x1xf32, #tpu.memory_space<vmem>>, %arg8: memref<8x1xf32, #tpu.memory_space<vmem>>) attributes {dimension_semantics = [#tpu.dimension_semantics<parallel>], iteration_bounds = array<i64: 1>, scalar_prefetch = 0 : i64, scratch_operands = 0 : i64, tpu.core_type = #tpu.core_type<tc>, window_params = [{transform_indices = @transform_0, window_bounds = array<i64: 8, 16>}, {transform_indices = @transform_1, window_bounds = array<i64: 8, 8>}, {pipeline_mode = #tpu.pipeline_mode<synchronous>, transform_indices = @transform_2, window_bounds = array<i64: 16, 8>}, {pipeline_mode = #tpu.pipeline_mode<synchronous>, transform_indices = @transform_3, window_bounds = array<i64: 8, 8>}, {pipeline_mode = #tpu.pipeline_mode<synchronous>, transform_indices = @transform_4, window_bounds = array<i64: 1, 8>}, {pipeline_mode = #tpu.pipeline_mode<synchronous>, transform_indices = @transform_5, window_bounds = array<i64: 1, 8>}, {pipeline_mode = #tpu.pipeline_mode<synchronous>, transform_indices = @transform_6, window_bounds = array<i64: 1, 1>}, {transform_indices = @transform_7, window_bounds = array<i64: 8, 1>}]} {
    %c0 = arith.constant 0 : index
    %c0_0 = arith.constant 0 : index
    %0 = vector.load %arg1[%c0, %c0_0] : memref<8x16xbf16, #tpu.memory_space<vmem>>, vector<8x16xbf16>
    %c0_1 = arith.constant 0 : index
    %c0_2 = arith.constant 0 : index
    %1 = vector.load %arg3[%c0_1, %c0_2] : memref<16x8xbf16, #tpu.memory_space<vmem>>, vector<16x8xbf16>
    %cst = arith.constant dense<0.000000e+00> : vector<8x8xf32>
    %2 = tpu.matmul %0, %1, %cst {dimension_numbers = #tpu.dot_dimension_numbers<[1], [0], [0], [1], [0, 0, 1, 1], [], []>} : vector<8x16xbf16>, vector<16x8xbf16>, vector<8x8xf32> -> vector<8x8xf32>
    %c0_3 = arith.constant 0 : index
    %c0_4 = arith.constant 0 : index
    %3 = vector.load %arg2[%c0_3, %c0_4] : memref<8x8xbf16, #tpu.memory_space<vmem>>, vector<8x8xbf16>
    %c0_5 = arith.constant 0 : index
    %c0_6 = arith.constant 0 : index
    %4 = vector.load %arg4[%c0_5, %c0_6] : memref<8x8xbf16, #tpu.memory_space<vmem>>, vector<8x8xbf16>
    %cst_7 = arith.constant dense<0.000000e+00> : vector<8x8xf32>
    %5 = tpu.matmul %3, %4, %cst_7 {dimension_numbers = #tpu.dot_dimension_numbers<[1], [0], [0], [1], [0, 0, 1, 1], [], []>} : vector<8x8xbf16>, vector<8x8xbf16>, vector<8x8xf32> -> vector<8x8xf32>
    %6 = arith.addf %2, %5 : vector<8x8xf32>
    %c0_8 = arith.constant 0 : index
    %c0_9 = arith.constant 0 : index
    %7 = vector.load %arg5[%c0_8, %c0_9] : memref<1x8xf32, #tpu.memory_space<vmem>>, vector<1x8xf32>
    %8 = vector.broadcast %7 : vector<1x8xf32> to vector<8x8xf32>
    %9 = arith.addf %6, %8 : vector<8x8xf32>
    %cst_10 = arith.constant 0.000000e+00 : f32
    %10 = vector.broadcast %cst_10 : f32 to vector<8x8xf32>
    %11 = arith.cmpf oge, %9, %10 : vector<8x8xf32>
    %cst_11 = arith.constant 0.00999999977 : f32
    %12 = vector.broadcast %cst_11 : f32 to vector<8x8xf32>
    %13 = arith.mulf %12, %9 : vector<8x8xf32>
    %14 = arith.select %11, %9, %13 : vector<8x8xi1>, vector<8x8xf32>
    %c0_12 = arith.constant 0 : index
    %c0_13 = arith.constant 0 : index
    %15 = vector.load %arg6[%c0_12, %c0_13] : memref<1x8xf32, #tpu.memory_space<vmem>>, vector<1x8xf32>
    %16 = vector.broadcast %15 : vector<1x8xf32> to vector<8x8xf32>
    %17 = arith.mulf %14, %16 : vector<8x8xf32>
    %cst_14 = arith.constant dense<0.000000e+00> : vector<8xf32>
    %18 = vector.multi_reduction <add>, %17, %cst_14 [1] : vector<8x8xf32> to vector<8xf32>
    %19 = vector.shape_cast %18 : vector<8xf32> to vector<8x1xf32>
    %c0_15 = arith.constant 0 : index
    %c0_16 = arith.constant 0 : index
    %20 = vector.load %arg7[%c0_15, %c0_16] : memref<1x1xf32, #tpu.memory_space<vmem>>, vector<1x1xf32>
    %21 = vector.broadcast %20 : vector<1x1xf32> to vector<8x1xf32>
    %22 = arith.addf %19, %21 : vector<8x1xf32>
    %c0_17 = arith.constant 0 : index
    %c0_18 = arith.constant 0 : index
    %23 = vector.load %arg8[%c0_17, %c0_18] : memref<8x1xf32, #tpu.memory_space<vmem>>, vector<8x1xf32>
    tpu.vector_store %arg8[%c0_17, %c0_18], %22 {strides = array<i32>} : memref<8x1xf32, #tpu.memory_space<vmem>>, vector<8x1xf32>,
    return
  }
  func.func @transform_0(%arg0: i32) -> (i32, i32) {
    %c0_i32 = arith.constant 0 : i32
    %c0_i32_0 = arith.constant 0 : i32
    return %arg0, %c0_i32 : i32, i32
  }
  func.func @transform_1(%arg0: i32) -> (i32, i32) {
    %c0_i32 = arith.constant 0 : i32
    %c0_i32_0 = arith.constant 0 : i32
    return %arg0, %c0_i32 : i32, i32
  }
  func.func @transform_2(%arg0: i32) -> (i32, i32) {
    %c0_i32 = arith.constant 0 : i32
    %c0_i32_0 = arith.constant 0 : i32
    %c0_i32_1 = arith.constant 0 : i32
    return %c0_i32, %c0_i32_0 : i32, i32
  }
  func.func @transform_3(%arg0: i32) -> (i32, i32) {
    %c0_i32 = arith.constant 0 : i32
    %c0_i32_0 = arith.constant 0 : i32
    %c0_i32_1 = arith.constant 0 : i32
    return %c0_i32, %c0_i32_0 : i32, i32
  }
  func.func @transform_4(%arg0: i32) -> (i32, i32) {
    %c0_i32 = arith.constant 0 : i32
    %c0_i32_0 = arith.constant 0 : i32
    %c0_i32_1 = arith.constant 0 : i32
    return %c0_i32, %c0_i32_0 : i32, i32
  }
  func.func @transform_5(%arg0: i32) -> (i32, i32) {
    %c0_i32 = arith.constant 0 : i32
    %c0_i32_0 = arith.constant 0 : i32
    %c0_i32_1 = arith.constant 0 : i32
    return %c0_i32, %c0_i32_0 : i32, i32
  }
  func.func @transform_6(%arg0: i32) -> (i32, i32) {
    %c0_i32 = arith.constant 0 : i32
    %c0_i32_0 = arith.constant 0 : i32
    %c0_i32_1 = arith.constant 0 : i32
    return %c0_i32, %c0_i32_0 : i32, i32
  }
  func.func @transform_7(%arg0: i32) -> (i32, i32) {
    %c0_i32 = arith.constant 0 : i32
    %c0_i32_0 = arith.constant 0 : i32
    return %arg0, %c0_i32 : i32, i32
  }
}

</mosaic_0001>

<bundles_post_ra>
// kernel: tpu_custom_call.1
= control target key start
LH: loop header
LB: loop body
LE: loop exit
PB: predicated region body
PF: predicated region fallthrough
CT: control target
= control target key end

     0   :  { %vm38_vm0 = vcmask 1043456   ;;  %v193_v0 = vmov 0.0   ;;  %vm194_vm1 = vmmov 0   ;;  %vm34_vm2 = vcmask 64512   ;;  %s261_s3 = inlined_call_operand.vmem [shape: bf16[8,8], index: 3, kind: input, shape index: {}]   ;;  %s262_s2 = inlined_call_operand.vmem [shape: bf16[16,8], index: 2, kind: input, shape index: {}]   ;;  %s263_s1 = inlined_call_operand.vmem [shape: bf16[8,8], index: 1, kind: input, shape index: {}]   ;;  %s264_s0 = inlined_call_operand.vmem [shape: bf16[8,16], index: 0, kind: input, shape index: {}]   ;;  %s265_s6 = inlined_call_operand.<no memory space> [shape: f32[1,1], index: 6, kind: input, shape index: {}]   ;;  %s266_s4 = inlined_call_operand.vmem [shape: f32[1,8], index: 4, kind: input, shape index: {}]   ;;  %s267_s5 = inlined_call_operand.vmem [shape: f32[1,8], index: 5, kind: input, shape index: {}]   ;;  %s268_s7 = inlined_call_operand.vmem [shape: f32[8,1], index: 7, kind: output, shape index: {}]  }
   0x1   :  { %178 = vmatprep.subr.bf16.mxu0 %v193_v0  ;;  %v33_v1 = vld [vmem:[%s261_s3] sm:$0xf]  ;;  %184 = vmatprep.subr.bf16.mxu1 %v193_v0  ;;  %vm88_vm3 = vcmask 130048   ;;  %v12_v6 = vstv %s265_s6  ;;  %vm162_vm5 = vcmask 7168  }
   0x2   :  { %v40_v2 = vsel %vm38_vm0, %v33_v1, 0  ;;  %v192_v3 = vld [vmem:[%s262_s2] sm:$0xff]   ;;  %180 = vmatprep.mubr.msk.bf16.mxu0 %vm194_vm1, %v193_v0  ;;  %186 = vmatprep.mubr.msk.bf16.mxu1 %vm194_vm1, %v193_v0  ;;  %13 = vst [vmem:[#allocation2] sm:$0x1] %v12_v6 }
   0x3   :  { %179 = vmatpush3.bf16.msra.mxu0 %v40_v2  ;;  %v32_v4 = vld [vmem:[%s263_s1] sm:$0xf]  ;;  %185 = vmatpush3.bf16.msra.mxu1 %v192_v3 }
   0x4   :  { %v29_v5 = vld [vmem:[%s264_s0] sm:$0xf] }
   0x5   :  { %v171_v9 = vld [vmem:[%s266_s4] ss:$0 sm:$0xff] }
   0x6   :  { %181 = vmatmul.mubr.msk.bf16.vlgmr.msra.gmra.mxu0 %vm34_vm2, %v32_v4  ;;  %187 = vmatmul.mubr.msk.bf16.vlgmr.msra.gmra.mxu1 %vm88_vm3, %v29_v5  ;;  %v172_v18 = vld [vmem:[%s267_s5] ss:$0 sm:$0xff] }
   0x9   :  { %v173_v23 = vld [vmem:[#allocation2] ss:$0 sm:$0xff] }
  0xc6   :  { %v76_v7 = vpop.f32.mrf.mxu0  ;;  %v126_v8 = vpop.f32.mrf.mxu1 }
  0xc7   :  { %v127_v10 = vadd.f32 %v126_v8, %v76_v7 }
  0xc8   :  { %v182_v11 = vpop.f32.mrf.mxu0  ;;  %v188_v12 = vpop.f32.mrf.mxu1 }
  0xc9   :  { %v139_v13 = vadd.f32 %v171_v9, %v127_v10 }
  0xca   :  { %v79_v14 = vpop.f32.mrf.mxu0  ;;  %v129_v15 = vpop.f32.mrf.mxu1 }
  0xcb   :  { %v141_v16 = vmul.f32 0.01, %v139_v13  ;;  %vm140_vm4 = vcmp.ge.f32.partialorder %v139_v13, 0.0 }
  0xcc   :  { %v183_v17 = vpop.f32.mrf.mxu0  ;;  %v189_v19 = vpop.f32.mrf.mxu1 }
  0xcd   :  { %v142_v20 = vsel %vm140_vm4, %v139_v13, %v141_v16 }
  0xce   :  { %v150_v21 = vmul.f32 %v172_v18, %v142_v20 }
  0xd0   :  { %v151_v22 = vsel %vm34_vm2, %v150_v21, 0.0 }
  0xd1   :  { %152 = vadd.xlane.f32.xlu0 %v151_v22 }
 0x15a   :  { %v153_v24 = vpop.xlane.xlu0 %152 }
 0x15b   :  { %v161_v25 = vadd.f32 %v173_v23, %v153_v24 }
 0x15d   :  { %163 = vst.msk [vmem:[%s268_s7] sm:$0xff] %vm162_vm5, %v161_v25 }

</bundles_post_ra>
